<compile_context>
chip_gen: v6e
topology: v6e:2x2x1
jax: 0.10.0
libtpu: 0.0.40
codegen_flags: <defaults>
</compile_context>

<pallas_src>
import functools
import math

import jax
import jax.numpy as jnp
from jax.experimental import pallas as pl
from jax.experimental.pallas import tpu as pltpu


MATMUL_INPUT_DTYPE = jnp.bfloat16   # MXU feed dtype (fp32 accumulation kept)
ACT_DTYPE = jnp.bfloat16            # inter-kernel activation dtype

# tile budgets
_TM, _TN, _TK = 256, 256, 2560
_TQ, _TKV = 512, 512
_TM_LN = 256
_SEQ_ALIGN = 128
_NEG_BIG = -1e30


def _round_up(x, m):
    return ((x + m - 1) // m) * m


def _pick_tile(dim, align, max_tile):
    """Largest multiple of `align` <= max_tile that divides round_up(dim, align)."""
    padded = _round_up(dim, align)
    if padded <= max_tile:
        return padded
    t = (max_tile // align) * align
    while t > align and padded % t:
        t -= align
    return t


# ----------------------------------------------------------------------------
# Pallas kernels
# ----------------------------------------------------------------------------
def _linear_kernel(x_ref, w_ref, *rest, activation, has_bias, has_residual):
    idx = 0
    b_ref = rest[idx] if has_bias else None
    idx += int(has_bias)
    r_ref = rest[idx] if has_residual else None
    idx += int(has_residual)
    o_ref = rest[idx]
    acc_ref = rest[idx + 1]

    k = pl.program_id(2)

    @pl.when(k == 0)
    def _():
        acc_ref[...] = jnp.zeros_like(acc_ref)

    acc_ref[...] += jnp.dot(x_ref[...], w_ref[...],
                            preferred_element_type=jnp.float32)

    @pl.when(k == pl.num_programs(2) - 1)
    def _():
        y = acc_ref[...]
        if has_bias:
            y = y + b_ref[...].astype(jnp.float32)
        if activation == "gelu":
            # exact GELU (matches torch nn.GELU / F.gelu default, erf-based)
            y = 0.5 * y * (1.0 + jax.lax.erf(y * (1.0 / math.sqrt(2.0))))
        if has_residual:
            y = y + r_ref[...].astype(jnp.float32)
        o_ref[...] = y.astype(o_ref.dtype)


def _layernorm_kernel(x_ref, g_ref, b_ref, o_ref):
    x = x_ref[...].astype(jnp.float32)
    mean = jnp.mean(x, axis=-1, keepdims=True)
    c = x - mean
    var = jnp.mean(c * c, axis=-1, keepdims=True)
    y = c * jax.lax.rsqrt(var + 1e-5)
    o_ref[...] = (y * g_ref[...] + b_ref[...]).astype(o_ref.dtype)


def _attention_kernel(q_ref, k_ref, v_ref, o_ref, m_sc, l_sc, acc_sc, *,
                      hg, dh, tq, tkv, kv_len, causal, need_len_mask):
    # grid = (batch*group, q_tile, kv_tile); online softmax across kv tiles.
    # blocks are lane-dense (tq, hg*dh) / (tkv, hg*dh) head-group slabs.
    t = pl.program_id(2)

    @pl.when(t == 0)
    def _():
        m_sc[...] = jnp.full_like(m_sc, _NEG_BIG)
        l_sc[...] = jnp.zeros_like(l_sc)
        acc_sc[...] = jnp.zeros_like(acc_sc)

    q = q_ref[0]          # (tq,  hg*dh) bf16 (scale pre-folded into weights)
    k = k_ref[0]          # (tkv, hg*dh) bf16
    v = v_ref[0]          # (tkv, hg*dh) bf16

    # in-kernel mask (no mask DMA): causal + padded-key length masking
    valid = None
    if need_len_mask or causal:
        kv_pos = t * tkv + jax.lax.broadcasted_iota(jnp.int32, (tq, tkv), 1)
        if need_len_mask:
            valid = kv_pos < kv_len
        if causal:
            q_pos = pl.program_id(1) * tq + jax.lax.broadcasted_iota(
                jnp.int32, (tq, tkv), 0)
            c = kv_pos <= q_pos
            valid = c if valid is None else jnp.logical_and(valid, c)

    for h in range(hg):
        sl = slice(h * dh, (h + 1) * dh)
        qh, kh, vh = q[:, sl], k[:, sl], v[:, sl]
        # QK^T, bf16 MXU feed, fp32 accumulate
        s = jax.lax.dot_general(qh, kh, (((1,), (1,)), ((), ())),
                                preferred_element_type=jnp.float32)  # (tq, tkv)
        if valid is not None:
            s = jnp.where(valid, s, -jnp.inf)

        m_prev = m_sc[h]                                   # (tq, 1)
        m_new = jnp.maximum(m_prev, jnp.max(s, axis=-1, keepdims=True))
        m_new = jnp.maximum(m_new, _NEG_BIG)               # NaN guard (fully masked row)
        alpha = jnp.exp(m_prev - m_new)
        p = jnp.exp(s - m_new)
        l_sc[h] = alpha * l_sc[h] + jnp.sum(p, axis=-1, keepdims=True)
        pv = jnp.dot(p.astype(vh.dtype), vh,               # PV in bf16
                     preferred_element_type=jnp.float32)   # (tq, dh)
        acc_sc[:, sl] = alpha * acc_sc[:, sl] + pv
        m_sc[h] = m_new

    @pl.when(t == pl.num_programs(2) - 1)
    def _():
        for h in range(hg):
            sl = slice(h * dh, (h + 1) * dh)
            l = l_sc[h]
            inv = pl.reciprocal(l, approx=True)   # EUP path
            inv = inv * (2.0 - l * inv)           # one Newton step
            acc_sc[:, sl] = acc_sc[:, sl] * inv
        o_ref[0] = acc_sc[...].astype(o_ref.dtype)   # lane-dense single store


# ----------------------------------------------------------------------------
# Pallas wrappers
# ----------------------------------------------------------------------------
def linear(x2d, w_kn, b=None, *, activation=None, residual=None,
           out_dtype=None, max_tm=_TM, max_tn=_TN):
    """x2d: (M, K); w_kn: (K, N) pre-transposed; optional bias (N,), fused GELU,
    fused residual add (M, N). Returns (M, N) in out_dtype (default ACT_DTYPE)."""
    M, K = x2d.shape
    K2, N = w_kn.shape
    assert K == K2
    out_dtype = ACT_DTYPE if out_dtype is None else out_dtype
    has_bias = b is not None
    has_res = residual is not None

    tm = min(max_tm, _round_up(M, 8))
    tn = _pick_tile(N, 128, max_tn)
    tk = _pick_tile(K, 128, _TK)
    Mp, Np, Kp = _round_up(M, tm), _round_up(N, tn), _round_up(K, tk)

    xp = x2d
    if Mp != M or Kp != K:
        xp = jnp.pad(x2d, ((0, Mp - M), (0, Kp - K)))
    wp = w_kn
    if Kp != K or Np != N:
        wp = jnp.pad(w_kn, ((0, Kp - K), (0, Np - N)))
    xp = xp.astype(MATMUL_INPUT_DTYPE)
    wp = wp.astype(MATMUL_INPUT_DTYPE)

    in_specs = [
        pl.BlockSpec((tm, tk), lambda i, j, k: (i, k)),
        pl.BlockSpec((tk, tn), lambda i, j, k: (k, j)),
    ]
    args = [xp, wp]
    if has_bias:
        bp = b.astype(jnp.float32).reshape(1, N)
        if Np != N:
            bp = jnp.pad(bp, ((0, 0), (0, Np - N)))
        in_specs.append(pl.BlockSpec((1, tn), lambda i, j, k: (0, j)))
        args.append(bp)
    if has_res:
        rp = residual
        if Mp != M or Np != N:
            rp = jnp.pad(residual, ((0, Mp - M), (0, Np - N)))
        in_specs.append(pl.BlockSpec((tm, tn), lambda i, j, k: (i, j)))
        args.append(rp)

    out = pl.pallas_call(
        functools.partial(_linear_kernel, activation=activation,
                          has_bias=has_bias, has_residual=has_res),
        out_shape=jax.ShapeDtypeStruct((Mp, Np), out_dtype),
        grid=(Mp // tm, Np // tn, Kp // tk),
        in_specs=in_specs,
        out_specs=pl.BlockSpec((tm, tn), lambda i, j, k: (i, j)),
        scratch_shapes=[pltpu.VMEM((tm, tn), jnp.float32)],
        compiler_params=pltpu.CompilerParams(
            dimension_semantics=("parallel", "parallel", "arbitrary")),
    )(*args)
    if Mp != M or Np != N:
        out = out[:M, :N]
    return out


def layernorm(x2d, g, b, out_dtype=None):
    M, D = x2d.shape
    out_dtype = ACT_DTYPE if out_dtype is None else out_dtype
    tm = min(_TM_LN, _round_up(M, 8))
    Mp = _round_up(M, tm)
    xp = x2d if Mp == M else jnp.pad(x2d, ((0, Mp - M), (0, 0)))
    out = pl.pallas_call(
        _layernorm_kernel,
        out_shape=jax.ShapeDtypeStruct((Mp, D), out_dtype),
        grid=(Mp // tm,),
        in_specs=[
            pl.BlockSpec((tm, D), lambda i: (i, 0)),
            pl.BlockSpec((1, D), lambda i: (0, 0)),
            pl.BlockSpec((1, D), lambda i: (0, 0)),
        ],
        out_specs=pl.BlockSpec((tm, D), lambda i: (i, 0)),
        compiler_params=pltpu.CompilerParams(dimension_semantics=("parallel",)),
    )(xp, g.astype(jnp.float32).reshape(1, D), b.astype(jnp.float32).reshape(1, D))
    return out[:M] if Mp != M else out


def _pick_head_group(n_head, dh):
    """Heads per grid step: lane-dense group width (multiple of 128, <=256) or full D."""
    if n_head * dh <= 256:
        return n_head
    best = 0
    for hg in range(1, n_head + 1):
        if n_head % hg == 0 and hg * dh <= 256 and (hg * dh) % 128 == 0:
            best = hg
    return best if best else n_head


def attention(q, k, v, n_head, *, causal=False, kv_len=None, out_dtype=None):
    """q: (B, Tq, D), k/v: (B, Tk, D) -> (B, Tq, D).
    Scale Dh**-0.25 is already folded into the q/k projection weights."""
    B, Tq, D = q.shape
    Tk = k.shape[1]
    assert D % n_head == 0
    dh = D // n_head
    hg = _pick_head_group(n_head, dh)
    ng = n_head // hg
    gw = hg * dh

    tq = _TQ if Tq > _TQ else _round_up(Tq, 8)
    Tq_pad = _round_up(Tq, tq)
    tkv = _TKV if Tk > _TKV else _round_up(Tk, 8)
    Tk_pad = _round_up(Tk, tkv)

    kv_len = Tk if kv_len is None else kv_len
    need_len_mask = kv_len < Tk_pad

    if Tq_pad != Tq:
        q = jnp.pad(q, ((0, 0), (0, Tq_pad - Tq), (0, 0)))
    if Tk_pad != Tk:
        k = jnp.pad(k, ((0, 0), (0, Tk_pad - Tk), (0, 0)))
        v = jnp.pad(v, ((0, 0), (0, Tk_pad - Tk), (0, 0)))

    q = q.astype(MATMUL_INPUT_DTYPE)
    k = k.astype(MATMUL_INPUT_DTYPE)
    v = v.astype(MATMUL_INPUT_DTYPE)

    qo_map = lambda bg, qi, t: (bg // ng, qi, bg % ng)
    kv_map = lambda bg, qi, t: (bg // ng, t, bg % ng)

    out = pl.pallas_call(
        functools.partial(_attention_kernel, hg=hg, dh=dh, tq=tq, tkv=tkv,
                          kv_len=kv_len, causal=causal,
                          need_len_mask=need_len_mask),
        out_shape=jax.ShapeDtypeStruct((B, Tq_pad, D),
                                       ACT_DTYPE if out_dtype is None else out_dtype),
        grid=(B * ng, Tq_pad // tq, Tk_pad // tkv),
        in_specs=[
            pl.BlockSpec((1, tq, gw), qo_map),
            pl.BlockSpec((1, tkv, gw), kv_map),
            pl.BlockSpec((1, tkv, gw), kv_map),
        ],
        out_specs=pl.BlockSpec((1, tq, gw), qo_map),
        scratch_shapes=[
            pltpu.VMEM((hg, tq, 1), jnp.float32),   # running max (per head)
            pltpu.VMEM((hg, tq, 1), jnp.float32),   # running sum (per head)
            pltpu.VMEM((tq, gw), jnp.float32),      # lane-dense output accumulator
        ],
        compiler_params=pltpu.CompilerParams(
            dimension_semantics=("parallel", "parallel", "arbitrary")),
    )(q, k, v)
    return out[:, :Tq, :] if Tq_pad != Tq else out


# ----------------------------------------------------------------------------
# Model glue (matches the PyTorch module structure; no kv_cache path)
# ----------------------------------------------------------------------------
def conv1d_gelu(x, w_kn, b, stride, padding, ksize=3):
    """PyTorch-style Conv1d (NCW) + exact GELU via im2col + tiled Pallas matmul.
    x: (B, Cin, L); w_kn: (Cin*ksize, Cout) == torch weight.reshape(Cout,-1).T"""
    B, Cin, L = x.shape
    Cout = w_kn.shape[1]
    xp = jnp.pad(x, ((0, 0), (0, 0), (padding, padding)))
    L_out = (L + 2 * padding - ksize) // stride + 1
    idx = jnp.arange(L_out) * stride
    cols = [xp[:, :, idx + t] for t in range(ksize)]            # ksize x (B, Cin, L_out)
    patches = jnp.stack(cols, axis=3)                           # (B, Cin, L_out, K)
    patches = patches.transpose(0, 2, 1, 3).reshape(B * L_out, Cin * ksize)
    y = linear(patches, w_kn, b, activation="gelu")
    return y.reshape(B, L_out, Cout).transpose(0, 2, 1)         # (B, Cout, L_out)


def mha_forward(x, p, n_head, xa=None, causal=False, kv_len=None, residual=None):
    B, T, D = x.shape
    src = x if xa is None else xa
    Ts = src.shape[1]
    q = linear(x.reshape(B * T, D), p["wq"], p["bq"]).reshape(B, T, D)
    k = linear(src.reshape(B * Ts, D), p["wk"], None).reshape(B, Ts, D)
    v = linear(src.reshape(B * Ts, D), p["wv"], p["bv"]).reshape(B, Ts, D)
    wv = attention(q, k, v, n_head, causal=causal, kv_len=kv_len)
    # residual add fused into the output-projection epilogue
    return linear(wv.reshape(B * T, D), p["wo"], p["bo"], residual=residual)


def residual_block(x2d, p, n_head, B, T, xa=None, xa_len=None,
                   causal=False, self_kv_len=None):
    D = x2d.shape[-1]
    h = layernorm(x2d, p["attn_ln_g"], p["attn_ln_b"]).reshape(B, T, D)
    x2d = mha_forward(h, p["attn"], n_head, causal=causal,
                      kv_len=self_kv_len, residual=x2d)
    if "cross_attn" in p:
        h = layernorm(x2d, p["cross_ln_g"], p["cross_ln_b"]).reshape(B, T, D)
        x2d = mha_forward(h, p["cross_attn"], n_head, xa=xa,
                          kv_len=xa_len, residual=x2d)
    h = layernorm(x2d, p["mlp_ln_g"], p["mlp_ln_b"])
    h = linear(h, p["mlp_w1"], p["mlp_b1"], activation="gelu")
    x2d = linear(h, p["mlp_w2"], p["mlp_b2"], residual=x2d)      # fused residual
    return x2d


def encoder_forward(mel, p, n_head, n_layer):
    x = conv1d_gelu(mel, p["conv1_w"], p["conv1_b"], stride=1, padding=1)
    x = conv1d_gelu(x, p["conv2_w"], p["conv2_b"], stride=2, padding=1)
    x = x.transpose(0, 2, 1)                                     # (B, T, D)
    assert x.shape[1:] == p["pos_emb"].shape, "incorrect audio shape"
    x = (x + p["pos_emb"]).astype(ACT_DTYPE)
    B, T, D = x.shape
    # pad sequence once at model level; padded keys are masked in-kernel (kv_len=T)
    Tp = _round_up(T, _SEQ_ALIGN)
    if Tp != T:
        x = jnp.pad(x, ((0, 0), (0, Tp - T), (0, 0)))
    x2d = x.reshape(B * Tp, D)
    for i in range(n_layer):
        x2d = residual_block(x2d, p["blocks"][i], n_head, B, Tp, self_kv_len=T)
    # TODO(synk): reference encoder also returns per-block avg_pool2d((20,1))
    # activations (all_x); they are unused by Whisper.forward's decoder path.
    x2d = layernorm(x2d, p["ln_post_g"], p["ln_post_b"])
    return x2d.reshape(B, Tp, D), T          # padded audio features + true length


def decoder_forward(tokens, xa, xa_len, p, n_head, n_layer, n_vocab):
    B, T = tokens.shape
    D = p["pos_emb"].shape[-1]
    x = (p["tok_emb"][tokens] + p["pos_emb"][:T]).astype(ACT_DTYPE)   # offset=0 (no kv_cache)
    Tp = _round_up(T, 8)
    if Tp != T:
        x = jnp.pad(x, ((0, 0), (0, Tp - T), (0, 0)))
    x2d = x.reshape(B * Tp, D)
    for i in range(n_layer):
        # causal mask is generated in-kernel (iota compare); no mask buffer DMA
        x2d = residual_block(x2d, p["blocks"][i], n_head, B, Tp,
                             xa=xa, xa_len=xa_len, causal=True)
    x2d = layernorm(x2d, p["ln_g"], p["ln_b"])
    # logits: whole (padded) M in a single i-tile; bf16 vocab weight streamed once
    logits = linear(x2d, p["tok_emb_t"], None, out_dtype=jnp.float32, max_tm=1024)
    return logits.reshape(B, Tp, -1)[:, :T, :n_vocab]


def whisper_forward(mel, tokens, params, dims):
    # TODO(synk): reference Whisper.forward passes the encoder's (x, all_x) tuple
    # straight into the decoder (a latent bug in the torch code); we use the
    # ln_post output x as the audio features, matching standard Whisper.
    xa, xa_len = encoder_forward(mel, params["encoder"],
                                 dims["n_audio_head"], dims["n_audio_layer"])
    return decoder_forward(tokens, xa, xa_len, params["decoder"],
                           dims["n_text_head"], dims["n_text_layer"],
                           dims["n_vocab"])


# ----------------------------------------------------------------------------
# Deterministic parameter initialization.
# All linear weights are stored PRE-TRANSPOSED in (in_features, out_features)
# layout (torch weight.T) and in bf16; the Dh**-0.25 attention scale is folded
# into wq/bq and wk at prep time.  LayerNorm params / biases stay fp32.
# ----------------------------------------------------------------------------
def sinusoids(length, channels, max_timescale=10000):
    assert channels % 2 == 0
    log_inc = math.log(max_timescale) / (channels // 2 - 1)
    inv = jnp.exp(-log_inc * jnp.arange(channels // 2, dtype=jnp.float32))
    scaled = jnp.arange(length, dtype=jnp.float32)[:, None] * inv[None, :]
    return jnp.concatenate([jnp.sin(scaled), jnp.cos(scaled)], axis=1)


def _init_mha(key, d, n_head):
    scale = float(d // n_head) ** -0.25     # folded into q/k projections (prep step)
    ks = jax.random.split(key, 4)
    w = lambda k_, s: 0.02 * jax.random.normal(k_, s, jnp.float32)
    return dict(
        wq=(w(ks[0], (d, d)) * scale).astype(MATMUL_INPUT_DTYPE),
        bq=jnp.zeros((d,), jnp.float32),
        wk=(w(ks[1], (d, d)) * scale).astype(MATMUL_INPUT_DTYPE),
        wv=w(ks[2], (d, d)).astype(MATMUL_INPUT_DTYPE),
        bv=jnp.zeros((d,), jnp.float32),
        wo=w(ks[3], (d, d)).astype(MATMUL_INPUT_DTYPE),
        bo=jnp.zeros((d,), jnp.float32),
    )


def _init_block(key, d, n_head, cross):
    ks = jax.random.split(key, 4)
    p = dict(
        attn=_init_mha(ks[0], d, n_head),
        attn_ln_g=jnp.ones((d,), jnp.float32), attn_ln_b=jnp.zeros((d,), jnp.float32),
        mlp_w1=(0.02 * jax.random.normal(ks[1], (d, 4 * d), jnp.float32)
                ).astype(MATMUL_INPUT_DTYPE),
        mlp_b1=jnp.zeros((4 * d,), jnp.float32),
        mlp_w2=(0.02 * jax.random.normal(ks[2], (4 * d, d), jnp.float32)
                ).astype(MATMUL_INPUT_DTYPE),
        mlp_b2=jnp.zeros((d,), jnp.float32),
        mlp_ln_g=jnp.ones((d,), jnp.float32), mlp_ln_b=jnp.zeros((d,), jnp.float32),
    )
    if cross:
        p["cross_attn"] = _init_mha(ks[3], d, n_head)
        p["cross_ln_g"] = jnp.ones((d,), jnp.float32)
        p["cross_ln_b"] = jnp.zeros((d,), jnp.float32)
    return p


def init_whisper_params(key, dims):
    ke, kd = jax.random.split(key)
    da = dims["n_audio_state"]
    dt = dims["n_text_state"]

    kes = jax.random.split(ke, dims["n_audio_layer"] + 2)
    encoder = dict(
        # conv weights in (Cin*ksize, Cout) layout == torch weight.reshape(Cout,-1).T
        conv1_w=(0.02 * jax.random.normal(kes[0], (dims["n_mels"] * 3, da), jnp.float32)
                 ).astype(MATMUL_INPUT_DTYPE),
        conv1_b=jnp.zeros((da,), jnp.float32),
        conv2_w=(0.02 * jax.random.normal(kes[1], (da * 3, da), jnp.float32)
                 ).astype(MATMUL_INPUT_DTYPE),
        conv2_b=jnp.zeros((da,), jnp.float32),
        pos_emb=sinusoids(dims["n_audio_ctx"], da),
        blocks=[_init_block(kes[2 + i], da, dims["n_audio_head"], cross=False)
                for i in range(dims["n_audio_layer"])],
        ln_post_g=jnp.ones((da,), jnp.float32), ln_post_b=jnp.zeros((da,), jnp.float32),
    )

    kds = jax.random.split(kd, dims["n_text_layer"] + 2)
    tok_emb = 0.02 * jax.random.normal(kds[0], (dims["n_vocab"], dt), jnp.float32)
    vocab_pad = _round_up(dims["n_vocab"], 128)     # pre-pad so linear() never pads it
    tok_emb_t = jnp.pad(tok_emb.T, ((0, 0), (0, vocab_pad - dims["n_vocab"]))
                        ).astype(MATMUL_INPUT_DTYPE)
    decoder = dict(
        tok_emb=tok_emb,
        tok_emb_t=tok_emb_t,                        # (D, vocab_pad) bf16, lane-aligned
        pos_emb=0.02 * jax.random.normal(kds[1], (dims["n_text_ctx"], dt), jnp.float32),
        blocks=[_init_block(kds[2 + i], dt, dims["n_text_head"], cross=True)
                for i in range(dims["n_text_layer"])],
        ln_g=jnp.ones((dt,), jnp.float32), ln_b=jnp.zeros((dt,), jnp.float32),
    )
    # NOTE: ATModel is constructed in Whisper.__init__ but never used by forward().
    return dict(encoder=encoder, decoder=decoder)


# ----------------------------------------------------------------------------
if __name__ == "__main__":
    dims = dict(
        n_mels=8, n_audio_ctx=16, n_audio_state=32, n_audio_head=4, n_audio_layer=2,
        n_vocab=64, n_text_ctx=8, n_text_state=32, n_text_head=4, n_text_layer=2,
    )
    key = jax.random.PRNGKey(0)
    kp, km, kt = jax.random.split(key, 3)
    params = init_whisper_params(kp, dims)

    # mel: (batch, n_mels, 2 * n_audio_ctx) so conv2 (stride 2) yields n_audio_ctx frames
    mel = jax.random.normal(km, (2, dims["n_mels"], 2 * dims["n_audio_ctx"]), jnp.float32)
    tokens = jax.random.randint(kt, (2, dims["n_text_ctx"]), 0, dims["n_vocab"],
                                dtype=jnp.int32)

    logits = whisper_forward(mel, tokens, params, dims)
    jax.block_until_ready(logits)
    assert logits.shape == (2, dims["n_text_ctx"], dims["n_vocab"])
    assert logits.dtype == jnp.float32
    assert bool(jnp.all(jnp.isfinite(logits)))
    print("KERNEL_OK")
</pallas_src>

<mosaic_0001>
module attributes {stable_mosaic.version = 11 : i64} {
  func.func @_linear_kernel(%arg0: i32, %arg1: i32, %arg2: i32, %arg3: memref<64x128xbf16, #tpu.memory_space<vmem>>, %arg4: memref<128x128xbf16, #tpu.memory_space<vmem>>, %arg5: memref<1x128xf32, #tpu.memory_space<vmem>>, %arg6: memref<64x128xbf16, #tpu.memory_space<vmem>>, %arg7: memref<64x128xf32, #tpu.memory_space<vmem>>) attributes {dimension_semantics = [#tpu.dimension_semantics<parallel>, #tpu.dimension_semantics<parallel>, #tpu.dimension_semantics<arbitrary>], iteration_bounds = array<i64: 1, 1, 1>, scalar_prefetch = 0 : i64, scratch_operands = 1 : i64, tpu.core_type = #tpu.core_type<tc>, window_params = [{transform_indices = @transform_0, window_bounds = array<i64: 64, 128>}, {transform_indices = @transform_1, window_bounds = array<i64: 128, 128>}, {transform_indices = @transform_2, window_bounds = array<i64: 1, 128>}, {transform_indices = @transform_3, window_bounds = array<i64: 64, 128>}]} {
    %c0_i32 = arith.constant 0 : i32
    %0 = arith.cmpi eq, %arg2, %c0_i32 : i32
    %1 = arith.extui %0 : i1 to i32
    %c0_i32_0 = arith.constant 0 : i32
    %2 = arith.cmpi ne, %1, %c0_i32_0 : i32
    scf.if %2 {
      %cst_10 = arith.constant 0.000000e+00 : f32
      %12 = vector.broadcast %cst_10 : f32 to vector<64x128xf32>
      %c0_11 = arith.constant 0 : index
      %c0_12 = arith.constant 0 : index
      %13 = vector.load %arg7[%c0_11, %c0_12] : memref<64x128xf32, #tpu.memory_space<vmem>>, vector<64x128xf32>
      tpu.vector_store %arg7[%c0_11, %c0_12], %12 {strides = array<i32>} : memref<64x128xf32, #tpu.memory_space<vmem>>, vector<64x128xf32>,
    } else {
    }
    %c0 = arith.constant 0 : index
    %c0_1 = arith.constant 0 : index
    %3 = vector.load %arg7[%c0, %c0_1] : memref<64x128xf32, #tpu.memory_space<vmem>>, vector<64x128xf32>
    %c0_2 = arith.constant 0 : index
    %c0_3 = arith.constant 0 : index
    %4 = vector.load %arg3[%c0_2, %c0_3] : memref<64x128xbf16, #tpu.memory_space<vmem>>, vector<64x128xbf16>
    %c0_4 = arith.constant 0 : index
    %c0_5 = arith.constant 0 : index
    %5 = vector.load %arg4[%c0_4, %c0_5] : memref<128x128xbf16, #tpu.memory_space<vmem>>, vector<128x128xbf16>
    %cst = arith.constant dense<0.000000e+00> : vector<64x128xf32>
    %6 = tpu.matmul %4, %5, %cst {dimension_numbers = #tpu.dot_dimension_numbers<[1], [0], [0], [1], [0, 0, 1, 1], [], []>} : vector<64x128xbf16>, vector<128x128xbf16>, vector<64x128xf32> -> vector<64x128xf32>
    %7 = arith.addf %3, %6 : vector<64x128xf32>
    %c0_6 = arith.constant 0 : index
    %c0_7 = arith.constant 0 : index
    %8 = vector.load %arg7[%c0_6, %c0_7] : memref<64x128xf32, #tpu.memory_space<vmem>>, vector<64x128xf32>
    tpu.vector_store %arg7[%c0_6, %c0_7], %7 {strides = array<i32>} : memref<64x128xf32, #tpu.memory_space<vmem>>, vector<64x128xf32>,
    %c0_i32_8 = arith.constant 0 : i32
    %9 = arith.cmpi eq, %arg2, %c0_i32_8 : i32
    %10 = arith.extui %9 : i1 to i32
    %c0_i32_9 = arith.constant 0 : i32
    %11 = arith.cmpi ne, %10, %c0_i32_9 : i32
    scf.if %11 {
      %c0_10 = arith.constant 0 : index
      %c0_11 = arith.constant 0 : index
      %12 = vector.load %arg7[%c0_10, %c0_11] : memref<64x128xf32, #tpu.memory_space<vmem>>, vector<64x128xf32>
      %c0_12 = arith.constant 0 : index
      %c0_13 = arith.constant 0 : index
      %13 = vector.load %arg5[%c0_12, %c0_13] : memref<1x128xf32, #tpu.memory_space<vmem>>, vector<1x128xf32>
      %14 = vector.broadcast %13 : vector<1x128xf32> to vector<64x128xf32>
      %15 = arith.addf %12, %14 : vector<64x128xf32>
      %cst_14 = arith.constant 5.000000e-01 : f32
      %16 = vector.broadcast %cst_14 : f32 to vector<64x128xf32>
      %17 = arith.mulf %16, %15 : vector<64x128xf32>
      %cst_15 = arith.constant 0.707106769 : f32
      %18 = vector.broadcast %cst_15 : f32 to vector<64x128xf32>
      %19 = arith.mulf %15, %18 : vector<64x128xf32>
      %20 = math.erf %19 : vector<64x128xf32>
      %cst_16 = arith.constant 1.000000e+00 : f32
      %21 = vector.broadcast %cst_16 : f32 to vector<64x128xf32>
      %22 = arith.addf %21, %20 : vector<64x128xf32>
      %23 = arith.mulf %17, %22 : vector<64x128xf32>
      %24 = arith.truncf %23 : vector<64x128xf32> to vector<64x128xbf16>
      %c0_17 = arith.constant 0 : index
      %c0_18 = arith.constant 0 : index
      %25 = vector.load %arg6[%c0_17, %c0_18] : memref<64x128xbf16, #tpu.memory_space<vmem>>, vector<64x128xbf16>
      tpu.vector_store %arg6[%c0_17, %c0_18], %24 {strides = array<i32>} : memref<64x128xbf16, #tpu.memory_space<vmem>>, vector<64x128xbf16>,
    } else {
    }
    return
  }
  func.func @transform_0(%arg0: i32, %arg1: i32, %arg2: i32) -> (i32, i32) {
    %c0_i32 = arith.constant 0 : i32
    return %arg0, %arg2 : i32, i32
  }
  func.func @transform_1(%arg0: i32, %arg1: i32, %arg2: i32) -> (i32, i32) {
    %c0_i32 = arith.constant 0 : i32
    return %arg2, %arg1 : i32, i32
  }
  func.func @transform_2(%arg0: i32, %arg1: i32, %arg2: i32) -> (i32, i32) {
    %c0_i32 = arith.constant 0 : i32
    %c0_i32_0 = arith.constant 0 : i32
    return %c0_i32, %arg1 : i32, i32
  }
  func.func @transform_3(%arg0: i32, %arg1: i32, %arg2: i32) -> (i32, i32) {
    %c0_i32 = arith.constant 0 : i32
    return %arg0, %arg1 : i32, i32
  }
}

</mosaic_0001>

<bundles_post_ra>
// kernel: tpu_custom_call.1
= control target key start
LH: loop header
LB: loop body
LE: loop exit
PB: predicated region body
PF: predicated region fallthrough
CT: control target
= control target key end

     0   :  { %8 = vsyncpa [#allocation4], 0  ;;  %s614_s0 = inlined_call_operand.hbm [shape: bf16[64,128], index: 0, kind: input, shape index: {}]   ;;  %s615_s1 = inlined_call_operand.hbm [shape: bf16[128,128], index: 1, kind: input, shape index: {}]   ;;  %s616_s2 = inlined_call_operand.vmem [shape: f32[1,128], index: 2, kind: input, shape index: {}]   ;;  %s617_s3 = inlined_call_operand.hbm [shape: bf16[64,128], index: 3, kind: output, shape index: {}]  }
   0x1   :  { %9 = vsyncpa [#allocation7], 0 }
   0x2   :  { %10 = vsyncpa [#allocation5], 0  ;;  %s568_s12 = smov [#allocation3]  }
   0x3   :  { %s16_s13 = sshll.u32 %s568_s12, 4  ;;  %s17_s13 = int_to_ptr.vmem [resolvable:$true] %s16_s13 }
   0x4   :  { %s510_s14 = scalar_lea.vmem %s17_s13, 512  ;;  %p515_p1 = scmp.lt.s32.totalorder %s17_s13, %s17_s13 }
   0x5   :  { %p511_p0 = scmp.ne.s32.totalorder %s17_s13, %s510_s14  ;;  %p516_p2 = scmp.lt.s32.totalorder %s510_s14, %s510_s14 }
   0x7   :  { %p517_p3 = por %p516_p2, %p515_p1 }
   0x9   :  { %p518_p4 = pnand %p517_p3, %p511_p0 }
   0xb   :  { %521 = shalt.err (!%p518_p4)
}
   0xc   :  { %s569_s15 = smov 64   ;;  %s570_s16 = smov 4  }
   0xd   :  { %22 = dma.hbm_to_vmem [thread:$0]  %s614_s0, 512, %s17_s13, [#allocation4], %s569_s15, %s569_s15, %s570_s16  }
   0xe   :  { %s571_s19 = smov [#allocation6]  }
   0xf   :  { %s28_s20 = sshll.u32 %s571_s19, 4  ;;  %s29_s20 = int_to_ptr.vmem [resolvable:$true] %s28_s20 }
  0x10   :  { %s530_s21 = scalar_lea.vmem %s29_s20, 1024  ;;  %p535_p6 = scmp.lt.s32.totalorder %s29_s20, %s29_s20 }
  0x11   :  { %p531_p5 = scmp.ne.s32.totalorder %s29_s20, %s530_s21  ;;  %p536_p7 = scmp.lt.s32.totalorder %s530_s21, %s530_s21 }
  0x13   :  { %p537_p8 = por %p536_p7, %p535_p6 }
  0x15   :  { %p538_p9 = pnand %p537_p8, %p531_p5 }
  0x17   :  { %541 = shalt.err (!%p538_p9)
}
  0x18   :  { %34 = dma.hbm_to_vmem [thread:$0]  %s615_s1, 1024, %s29_s20, [#allocation7], %s569_s15, %s569_s15, %s570_s16  }
  0x19   :  { %562 = dma.done.wait [#allocation4], 512  }
  0x1a   :  { %563 = vsyncadd [#allocation4], 4294966784 }
  0x1b   :  { %564 = dma.done.wait [#allocation7], 1024  }
  0x1c   :  { %565 = vsyncadd [#allocation7], 4294966272  ;;  %v474_v0 = vld [vmem:[#allocation6 + $0x38] sm:$0xff]   ;;  %v475_v1 = vld [vmem:[#allocation6 + $0x30] sm:$0xff]  }
  0x1d   :  { %429 = vmatprep.subr.bf16.mxu0 %v474_v0  ;;  %453 = vmatprep.subr.bf16.mxu1 %v474_v0  ;;  %v476_v2 = vld [vmem:[#allocation6 + $0x28] sm:$0xff]   ;;  %v477_v3 = vld [vmem:[#allocation6 + $0x20] sm:$0xff]   ;;  %v483_v5 = vld [vmem:[#allocation3 + $0x10] sm:$0xff]  }
  0x1e   :  { %430 = vmatpush3.bf16.msra.mxu0 %v474_v0  ;;  %461 = vmatpush3.bf16.msra.mxu1 %v474_v0  ;;  %v482_v4 = vld [vmem:[#allocation3] sm:$0xff]   ;;  %v478_v6 = vld [vmem:[#allocation6 + $0x18] sm:$0xff]   ;;  %v479_v7 = vld [vmem:[#allocation6 + $0x10] sm:$0xff]  }
  0x1f   :  { %431 = vmatprep.subr.bf16.mxu0 %v475_v1  ;;  %454 = vmatprep.subr.bf16.mxu1 %v475_v1  ;;  %v480_v8 = vld [vmem:[#allocation6 + $0x8] sm:$0xff]   ;;  %v481_v9 = vld [vmem:[#allocation6] sm:$0xff]   ;;  %v485_v11 = vld [vmem:[#allocation3 + $0x18] sm:$0xff]  }
  0x20   :  { %445 = vmatprep.mubr.bf16.mxu0 %v482_v4  ;;  %449 = vmatprep.mubr.bf16.mxu1 %v483_v5  ;;  %v484_v10 = vld [vmem:[#allocation3 + $0x8] sm:$0xff]   ;;  %v377_v12 = vld [vmem:[%s616_s2] ss:$0 sm:$0xff]  ;;  %s572_s2 = smov [#allocation8]  }
  0x21   :  { %s352_s24 = sshll.u32 %s572_s2, 4  ;;  %s353_s24 = int_to_ptr.vmem [resolvable:$true] %s352_s24 }
  0x22   :  { %432 = vmatpush3.bf16.msra.mxu0 %v475_v1  ;;  %462 = vmatpush3.bf16.msra.mxu1 %v475_v1  ;;  %s542_s25 = scalar_lea.vmem %s353_s24, 512  ;;  %p547_p11 = scmp.lt.s32.totalorder %s353_s24, %s353_s24 }
  0x23   :  { %433 = vmatprep.subr.bf16.mxu0 %v476_v2  ;;  %455 = vmatprep.subr.bf16.mxu1 %v476_v2  ;;  %p543_p10 = scmp.ne.s32.totalorder %s353_s24, %s542_s25  ;;  %p548_p12 = scmp.lt.s32.totalorder %s542_s25, %s542_s25 }
  0x25   :  { %p549_p13 = por %p548_p12, %p547_p11 }
  0x26   :  { %434 = vmatpush3.bf16.msra.mxu0 %v476_v2  ;;  %463 = vmatpush3.bf16.msra.mxu1 %v476_v2 }
  0x27   :  { %435 = vmatprep.subr.bf16.mxu0 %v477_v3  ;;  %456 = vmatprep.subr.bf16.mxu1 %v477_v3  ;;  %p550_p0 = pnand %p549_p13, %p543_p10 }
  0x2a   :  { %436 = vmatpush3.bf16.msra.mxu0 %v477_v3  ;;  %464 = vmatpush3.bf16.msra.mxu1 %v477_v3 }
  0x2b   :  { %437 = vmatprep.subr.bf16.mxu0 %v478_v6  ;;  %457 = vmatprep.subr.bf16.mxu1 %v478_v6 }
  0x2e   :  { %438 = vmatpush3.bf16.msra.mxu0 %v478_v6  ;;  %465 = vmatpush3.bf16.msra.mxu1 %v478_v6 }
  0x2f   :  { %439 = vmatprep.subr.bf16.mxu0 %v479_v7  ;;  %458 = vmatprep.subr.bf16.mxu1 %v479_v7 }
  0x32   :  { %440 = vmatpush3.bf16.msra.mxu0 %v479_v7  ;;  %466 = vmatpush3.bf16.msra.mxu1 %v479_v7 }
  0x33   :  { %441 = vmatprep.subr.bf16.mxu0 %v480_v8  ;;  %459 = vmatprep.subr.bf16.mxu1 %v480_v8 }
  0x36   :  { %442 = vmatpush3.bf16.msra.mxu0 %v480_v8  ;;  %467 = vmatpush3.bf16.msra.mxu1 %v480_v8 }
  0x37   :  { %443 = vmatprep.subr.bf16.mxu0 %v481_v9  ;;  %460 = vmatprep.subr.bf16.mxu1 %v481_v9 }
  0x3a   :  { %444 = vmatpush3.bf16.msra.mxu0 %v481_v9  ;;  %468 = vmatpush3.bf16.msra.mxu1 %v481_v9 }
  0x3d   :  { %446 = vmatmul.mubr.bf16.vlgmr.msra.gmra.mxu0 %v484_v10  ;;  %450 = vmatmul.mubr.bf16.vlgmr.msra.gmra.mxu1 %v485_v11 }
  0xfd   :  { %v447_v13 = vpop.f32.mrf.mxu0  ;;  %v451_v14 = vpop.f32.mrf.mxu1 }
  0xfe   :  { %v261_v15 = vadd.f32 %v447_v13, %v377_v12  ;;  %v265_v16 = vadd.f32 %v451_v14, %v377_v12 }
  0xff   :  { %v194_v17 = vpop.f32.mrf.mxu0  ;;  %v210_v18 = vpop.f32.mrf.mxu1 }
 0x100   :  { %v277_v19 = vmul.f32 0.70710677, %v261_v15  ;;  %v281_v20 = vmul.f32 0.70710677, %v265_v16  ;;  %v259_v21 = vadd.f32 %v377_v12, %v194_v17  ;;  %v263_v22 = vadd.f32 %v377_v12, %v210_v18 }
 0x101   :  { %v448_v23 = vpop.f32.mrf.mxu0  ;;  %v452_v24 = vpop.f32.mrf.mxu1  ;;  %v269_v43 = vmul.f32 0.5, %v261_v15  ;;  %v273_v44 = vmul.f32 0.5, %v265_v16 }
 0x102   :  { %v262_v25 = vadd.f32 %v448_v23, %v377_v12  ;;  %v266_v26 = vadd.f32 %v452_v24, %v377_v12  ;;  %486 = verf.f32 %v277_v19  ;;  %v275_v27 = vmul.f32 0.70710677, %v259_v21 }
 0x103   :  { %v197_v28 = vpop.f32.mrf.mxu0  ;;  %v213_v29 = vpop.f32.mrf.mxu1  ;;  %488 = verf.f32 %v281_v20  ;;  %v279_v30 = vmul.f32 0.70710677, %v263_v22  ;;  %v267_v47 = vmul.f32 0.5, %v259_v21  ;;  %v271_v52 = vmul.f32 0.5, %v263_v22 }
 0x104   :  { %v278_v31 = vmul.f32 0.70710677, %v262_v25  ;;  %490 = verf.f32 %v275_v27  ;;  %v282_v32 = vmul.f32 0.70710677, %v266_v26  ;;  %v260_v33 = vadd.f32 %v377_v12, %v197_v28 }
 0x105   :  { %v264_v34 = vadd.f32 %v377_v12, %v213_v29  ;;  %492 = verf.f32 %v279_v30  ;;  %v270_v49 = vmul.f32 0.5, %v262_v25  ;;  %v274_v54 = vmul.f32 0.5, %v266_v26 }
 0x106   :  { %494 = verf.f32 %v278_v31  ;;  %v276_v35 = vmul.f32 0.70710677, %v260_v33  ;;  %v268_v59 = vmul.f32 0.5, %v260_v33 }
 0x107   :  { %496 = verf.f32 %v282_v32  ;;  %v280_v36 = vmul.f32 0.70710677, %v264_v34  ;;  %v272_v63 = vmul.f32 0.5, %v264_v34 }
 0x108   :  { %498 = verf.f32 %v276_v35 }
 0x109   :  { %500 = verf.f32 %v280_v36 }
 0x10f   :  { %v487_v37 = vpop.eup %486 }
 0x110   :  { %v489_v38 = vpop.eup %488  ;;  %v293_v41 = vadd.f32 1.0, %v487_v37 }
 0x111   :  { %v491_v39 = vpop.eup %490  ;;  %v297_v45 = vadd.f32 1.0, %v489_v38 }
 0x112   :  { %v493_v40 = vpop.eup %492  ;;  %v291_v48 = vadd.f32 1.0, %v491_v39  ;;  %v301_v57 = vmul.f32 %v293_v41, %v269_v43 }
 0x113   :  { %v495_v42 = vpop.eup %494  ;;  %v295_v53 = vadd.f32 1.0, %v493_v40  ;;  %v305_v61 = vmul.f32 %v297_v45, %v273_v44 }
 0x114   :  { %v497_v46 = vpop.eup %496  ;;  %v294_v50 = vadd.f32 1.0, %v495_v42  ;;  %v299_v1 = vmul.f32 %v291_v48, %v267_v47 }
 0x115   :  { %v499_v51 = vpop.eup %498  ;;  %v298_v55 = vadd.f32 1.0, %v497_v46  ;;  %v303_v4 = vmul.f32 %v295_v53, %v271_v52 }
 0x116   :  { %v501_v56 = vpop.eup %500  ;;  %v302_v58 = vmul.f32 %v294_v50, %v270_v49  ;;  %v292_v60 = vadd.f32 1.0, %v499_v51 }
 0x117   :  { %v306_v62 = vmul.f32 %v298_v55, %v274_v54  ;;  %v296_v0 = vadd.f32 1.0, %v501_v56 }
 0x118   :  { %v402_v2 = vpack.c.bf16 %v302_v58, %v301_v57  ;;  %v300_v3 = vmul.f32 %v292_v60, %v268_v59 }
 0x119   :  { %v412_v5 = vpack.c.bf16 %v306_v62, %v305_v61  ;;  %v304_v6 = vmul.f32 %v296_v0, %v272_v63 }
 0x11a   :  { %414 = vst [vmem:[#allocation8 + $0x8] sm:$0xff] %v402_v2   ;;  %v397_v7 = vpack.c.bf16 %v300_v3, %v299_v1 }
 0x11b   :  { %416 = vst [vmem:[#allocation8 + $0x18] sm:$0xff] %v412_v5   ;;  %v407_v8 = vpack.c.bf16 %v304_v6, %v303_v4 }
 0x11c   :  { %398 = vst [vmem:[#allocation8] sm:$0xff] %v397_v7  }
 0x11d   :  { %415 = vst [vmem:[#allocation8 + $0x10] sm:$0xff] %v407_v8  }
 0x11e   :  { %553 = shalt.err (!%p550_p0)
}
 0x11f   :  { %358 = dma.vmem_to_hbm [thread:$0]  %s353_s24, 512, %s617_s3, [#allocation5], %s569_s15, %s569_s15, %s570_s16  }
 0x120   :  { %566 = dma.done.wait [#allocation5], 512  }
 0x121   :  { %567 = vsyncadd [#allocation5], 4294966784 }
 0x122   :  { %362 = vsyncpa [#allocation4], 1 }
 0x123   :  { %363 = vsyncpa [#allocation7], 1 }
 0x124   :  { %364 = vsyncpa [#allocation5], 1 }

</bundles_post_ra>
